<compile_context>
chip_gen: v7x
topology: tpu7x:2x2x1
jax: 0.10.0
libtpu: 0.0.40
codegen_flags: <defaults>
</compile_context>

<pallas_src>
import jax
import jax.numpy as jnp
from jax.experimental import pallas as pl
from jax.experimental.pallas import tpu as pltpu


def _pe_add_kernel(x_ref, pe_ref, o_ref):
    # x_ref / o_ref: (1, tL, tD) block of one batch element.
    # pe_ref:        (tL, tD) slice of the positional table; its block index is
    #                batch-invariant, so it stays VMEM-resident across the
    #                innermost batch axis of the grid.
    # The add promotes to the wider dtype (table is typically f32); the single
    # cast per tile rides the free VPU slot under the DMA-bound add.
    o_ref[...] = (x_ref[...] + pe_ref[...]).astype(o_ref.dtype)


def _round_up(a, b):
    return -(-a // b) * b


def learnable_position_encoding(x, pos_emb_weight, *, tile_l=None, tile_d=None,
                                target_block_bytes=4 << 20, donate_x=False):
    """out = x + pos_emb_weight[:L] broadcast over batch.

    x: (B, L, D); pos_emb_weight: (max_len, D) with L <= max_len.
    """
    B, L, D = x.shape
    max_len, d_model = pos_emb_weight.shape
    assert d_model == D and L <= max_len

    x_bytes = jnp.dtype(x.dtype).itemsize
    w_bytes = jnp.dtype(pos_emb_weight.dtype).itemsize
    # Sublane packing factor of the narrower dtype: 8 (f32), 16 (bf16), 32 (i8/fp8).
    sub = 32 // min(x_bytes, w_bytes)

    # Preferred path: hand the FULL table to pallas_call (no wrapper slice/cast
    # pass over HBM).  Needs an 8*-aligned row tile to fit within the table.
    full_table = _round_up(L, sub) <= max_len
    pe = pos_emb_weight if full_table else pos_emb_weight[:L, :]
    pe_rows = pe.shape[0]

    # ---- lane (last) tile dim: widen first, keep 128-multiples ----
    if tile_d is not None:
        t_d = tile_d
    elif D % 128 == 0:
        lane_cap = max(128, (target_block_bytes // (sub * x_bytes)) // 128 * 128)
        t_d = min(D, 2048, lane_cap)
    else:
        # Full-dim escape: masked partial stores, acceptable for small/odd D.
        # TODO(synk): when D % 128 != 0 but (L*D) % 128 == 0, a flat
        # (B, L*D/128, 128) view would restore lane-dense stores.
        t_d = D

    # ---- sublane tile dim: dtype-aware multiple, rebalanced vs. L ----
    if tile_l is not None:
        t_l = tile_l
    elif not full_table:
        t_l = L                      # degenerate fallback: full-dim escape for x and pe
    else:
        rows = max(sub, (target_block_bytes // (t_d * x_bytes)) // sub * sub)
        t_l = min(rows, _round_up(L, sub))
        n_l_tmp = -(-L // t_l)
        t_l = _round_up(-(-L // n_l_tmp), sub)   # avoid a mostly-padded last block

    # Validate tiles against the (8,128)/full-dim BlockSpec rule and VMEM budget.
    assert t_d % 128 == 0 or t_d == D, f"tile_d={t_d} must be a 128-multiple or D"
    assert t_l % 8 == 0 or (t_l == L == pe_rows), \
        f"tile_l={t_l} must be an 8-multiple or the full (unsliced) length"
    assert t_l <= pe_rows, f"tile_l={t_l} exceeds table rows {pe_rows}"

    vmem_limit = 48 << 20            # < v7x's 64 MiB/TC physical; ample on v5e/v6e
    est_vmem = 2 * t_l * t_d * (2 * x_bytes + w_bytes)   # x, out, pe double-buffered
    assert est_vmem <= vmem_limit, \
        f"tiles ({t_l},{t_d}) need ~{est_vmem >> 20} MiB VMEM > {vmem_limit >> 20} MiB"

    n_l = pl.cdiv(L, t_l)
    n_d = pl.cdiv(D, t_d)
    # Grid order (l, d, b): batch innermost -> pe block index is unchanged
    # across consecutive steps, so pe is fetched once per (l, d) tile.
    grid = (n_l, n_d, B)

    # Safety note: when t_l does not divide L, the last pe block reads table
    # rows >= L.  Those rows exist (round_up(L, sub) <= max_len on this path)
    # and the matching padded x/out rows are never stored, so this is benign.
    return pl.pallas_call(
        _pe_add_kernel,
        out_shape=jax.ShapeDtypeStruct((B, L, D), x.dtype),
        grid_spec=pltpu.PrefetchScalarGridSpec(
            num_scalar_prefetch=0,
            grid=grid,
            in_specs=[
                pl.BlockSpec((1, t_l, t_d), lambda l, d, b: (b, l, d)),   # x
                pl.BlockSpec((t_l, t_d), lambda l, d, b: (l, d)),         # pe (b-invariant)
            ],
            out_specs=pl.BlockSpec((1, t_l, t_d), lambda l, d, b: (b, l, d)),
        ),
        compiler_params=pltpu.CompilerParams(
            # Megacore shards l/d; batch stays the innermost sequential axis on
            # each core so the pe-resident trick survives sharding.
            dimension_semantics=("parallel", "parallel", "arbitrary"),
            vmem_limit_bytes=vmem_limit,
        ),
        cost_estimate=pl.CostEstimate(
            flops=B * L * D,
            transcendentals=0,
            bytes_accessed=2 * B * L * D * x_bytes + L * D * w_bytes,
        ),
        input_output_aliases=({0: 0} if donate_x else {}),
    )(x, pe)


if __name__ == "__main__":
    key = jax.random.PRNGKey(0)
    k_x, k_x2, k_w2 = jax.random.split(key, 3)

    # --- Module-consistent small shapes: batch=2, seq=8, d_model=32, max_len=16 ---
    B, L, D, MAX_LEN = 2, 8, 32, 16
    x = jax.random.normal(k_x, (B, L, D), dtype=jnp.float32)
    # Module __init__: nn.Embedding(max_len, d_model) weights init'd to 0.0.
    pos_emb_weight = jnp.zeros((MAX_LEN, D), dtype=jnp.float32)

    out = jax.block_until_ready(learnable_position_encoding(x, pos_emb_weight))
    ref = x + jnp.broadcast_to(pos_emb_weight[:L, :], (B, L, D))
    assert out.shape == (B, L, D)
    assert jnp.allclose(out, ref, atol=1e-6), "mismatch vs reference (zero table)"

    # --- Second check: non-zero table, multi-block grid, lane-dense 128-wide
    #     path, and a partial last L-block (table rows >= L read but never stored). ---
    B2, L2, D2, MAX_LEN2 = 2, 40, 256, 64
    x2 = jax.random.normal(k_x2, (B2, L2, D2), dtype=jnp.float32)
    w2 = jax.random.normal(k_w2, (MAX_LEN2, D2), dtype=jnp.float32)
    out2 = jax.block_until_ready(
        learnable_position_encoding(x2, w2, tile_l=16, tile_d=128))
    ref2 = x2 + jnp.broadcast_to(w2[:L2, :], (B2, L2, D2))
    assert jnp.allclose(out2, ref2, atol=1e-6), "mismatch vs reference (tiled path)"

    print("KERNEL_OK")
</pallas_src>

<mosaic_0001>
module attributes {stable_mosaic.version = 11 : i64} {
  func.func @_pe_add_kernel(%arg0: i32, %arg1: i32, %arg2: i32, %arg3: memref<1x8x32xf32, #tpu.memory_space<vmem>>, %arg4: memref<8x32xf32, #tpu.memory_space<vmem>>, %arg5: memref<1x8x32xf32, #tpu.memory_space<vmem>>) attributes {dimension_semantics = [#tpu.dimension_semantics<parallel>, #tpu.dimension_semantics<parallel>, #tpu.dimension_semantics<arbitrary>], iteration_bounds = array<i64: 1, 1, 2>, scalar_prefetch = 0 : i64, scratch_operands = 0 : i64, tpu.core_type = #tpu.core_type<tc>, window_params = [{transform_indices = @transform_0, window_bounds = array<i64: 1, 8, 32>}, {transform_indices = @transform_1, window_bounds = array<i64: 8, 32>}, {transform_indices = @transform_2, window_bounds = array<i64: 1, 8, 32>}]} {
    %c0 = arith.constant 0 : index
    %c0_0 = arith.constant 0 : index
    %c0_1 = arith.constant 0 : index
    %0 = vector.load %arg3[%c0, %c0_0, %c0_1] : memref<1x8x32xf32, #tpu.memory_space<vmem>>, vector<1x8x32xf32>
    %c0_2 = arith.constant 0 : index
    %c0_3 = arith.constant 0 : index
    %1 = vector.load %arg4[%c0_2, %c0_3] : memref<8x32xf32, #tpu.memory_space<vmem>>, vector<8x32xf32>
    %2 = vector.shape_cast %1 : vector<8x32xf32> to vector<1x8x32xf32>
    %3 = arith.addf %0, %2 : vector<1x8x32xf32>
    %c0_4 = arith.constant 0 : index
    %c0_5 = arith.constant 0 : index
    %c0_6 = arith.constant 0 : index
    %4 = vector.load %arg5[%c0_4, %c0_5, %c0_6] : memref<1x8x32xf32, #tpu.memory_space<vmem>>, vector<1x8x32xf32>
    tpu.vector_store %arg5[%c0_4, %c0_5, %c0_6], %3 {strides = array<i32>} : memref<1x8x32xf32, #tpu.memory_space<vmem>>, vector<1x8x32xf32>,
    return
  }
  func.func @transform_0(%arg0: i32, %arg1: i32, %arg2: i32) -> (i32, i32, i32) {
    %c0_i32 = arith.constant 0 : i32
    return %arg2, %arg0, %arg1 : i32, i32, i32
  }
  func.func @transform_1(%arg0: i32, %arg1: i32, %arg2: i32) -> (i32, i32) {
    %c0_i32 = arith.constant 0 : i32
    return %arg0, %arg1 : i32, i32
  }
  func.func @transform_2(%arg0: i32, %arg1: i32, %arg2: i32) -> (i32, i32, i32) {
    %c0_i32 = arith.constant 0 : i32
    return %arg2, %arg0, %arg1 : i32, i32, i32
  }
}

</mosaic_0001>

<bundles_post_ra>
// kernel: tpu_custom_call.1
= control target key start
LH: loop header
LB: loop body
LE: loop exit
PB: predicated region body
PF: predicated region fallthrough
CT: control target
= control target key end

     0   :  { %7 = vsyncpa [#allocation3], 0  ;;  %s801_s0 = inlined_call_operand.hbm [shape: f32[2,8,32], index: 0, kind: input, shape index: {}]   ;;  %s802_s1 = inlined_call_operand.hbm [shape: f32[16,32], index: 1, kind: input, shape index: {}]   ;;  %s803_s2 = inlined_call_operand.hbm [shape: f32[2,8,32], index: 2, kind: output, shape index: {}]  }
   0x1   :  { %9 = vsyncpa [#allocation3 + $0x1], 0 }
   0x2   :  { %10 = vsyncpa [#allocation6], 0 }
   0x3   :  { %11 = vsyncpa [#allocation4], 0 }
   0x4   :  { %13 = vsyncpa [#allocation4 + $0x1], 0  ;;  %s582_s9 = smov 0   ;;  %s584_s10 = smov 0  }
   0x5   :  { %s586_s11 = smov 0   ;;  %s588_s12 = smov 0  }
   0x6   :  { %s590_s13 = smov 0   ;;  %s592_s14 = smov 0  }
   0x7 LB: > { %s330_s15 = sadd.s32 4294967295, %s562_s14   ;;  %s331_s16 = sadd.s32 4294967294, %s562_s14   ;;  %s562_s14 = sphi %s592_s14, %s19_s14   ;;  %s558_s13 = sphi %s590_s13, %s828_s13   ;;  %s554_s12 = sphi %s588_s12, %s827_s12   ;;  %s550_s11 = sphi %s586_s11, %s826_s11   ;;  %s546_s10 = sphi %s584_s10, %s825_s10   ;;  %s542_s9 = sphi %s582_s9, %s824_s9  }
   0x8   : > { %p62_p0 = scmp.ne.s32.totalorder %s546_s10, %s542_s9  ;;  %p616_p1 = scmp.eq.s32.totalorder %s330_s15, 0 }
   0x9   : > { %p620_p2 = scmp.eq.s32.totalorder %s330_s15, 1  ;;  %p124_p3 = scmp.eq.s32.totalorder %s331_s16, 1 }
   0xa   : > { %s808_s17 = scalar_select %p616_p1, 1, 0 }
   0xb   : > { %s809_s18 = scalar_select %p620_p2, 1, 0 }
   0xc   : > { %p626_p4 = por %p616_p1, %p62_p0  ;;  %p332_p5 = scmp.ge.s32.totalorder %s562_s14, 1 }
   0xd   : > { %p631_p6 = por %p124_p3, %p62_p0  ;;  %p131_p7 = scmp.lt.s32.totalorder %s562_s14, 3 }
   0xe   : > { %s810_s19 = scalar_select %p626_p4, 1, 0 }
   0xf   : > { %s811_s20 = scalar_select %p631_p6, 1, 0 }
  0x10   : > { %p636_p8 = pnand %p332_p5, %p131_p7  ;;  %s564_s22 = smov [#allocation5]  }
  0x11   : > { %s147_s23 = sshll.u32 %s564_s22, 4  ;;  %s31_s25 = sadd.s32 1, %s558_s13  ;;  %s148_s23 = int_to_ptr.vmem [resolvable:$true] %s147_s23 }
  0x12   : > { %s812_s21 = scalar_select %p636_p8, 1, 0 }
  0x13   : > { %p353_p10 = pneg %p636_p8  ;;  %s49_s26 = sadd.s32 1, %s550_s11 }
  0x14   : > { %p651_p12 = scmp.ge.s32.totalorder %s31_s25, 2  ;;  %s418_s30 = scalar_lea.hbm %s802_s1, 128 }
  0x15   : > { %p645_p11 = pnand %p353_p10, %p616_p1  ;;  %p419_p13 = scmp.ne.s32.totalorder %s802_s1, %s418_s30 }
  0x16   : > { %s814_s27 = scalar_select %p651_p12, 1, 0 }
  0x17   : > { %p420_p0 = pneg %p645_p11  ;;  %s423_s7 = scalar_lea.hbm %s802_s1, 256 }
  0x18   : > { %p424_p7 = scmp.lt.u32.totalorder %s423_s7, %s418_s30  ;;  %p425_p10 = scmp.lt.u32.totalorder %s418_s30, %s802_s1 }
  0x19   : > { %p421_p3 = pnand %p420_p0, %p419_p13 }
  0x1a   : > { %p426_p9 = por %p425_p10, %p424_p7 }
  0x1b   : > { %p422_p5 = pneg %p421_p3 }
  0x1d   : > { %p427_p6 = pnand %p426_p9, %p422_p5 }
  0x1f   : > { %430 = shalt.err (!%p427_p6)
}
  0x20   : > { %s431_s16 = scalar_lea.vmem %s148_s23, 128  ;;  %p439_p2 = scmp.lt.s32.totalorder %s148_s23, %s148_s23 }
  0x21   : > { %p432_p1 = scmp.ne.s32.totalorder %s148_s23, %s431_s16  ;;  %p440_p12 = scmp.lt.s32.totalorder %s431_s16, %s431_s16 }
  0x23   : > { %p434_p4 = pnand %p432_p1, %p420_p0  ;;  %p441_p13 = por %p440_p12, %p439_p2 }
  0x25   : > { %p435_p8 = pneg %p434_p4 }
  0x27   : > { %p442_p3 = pnand %p441_p13, %p435_p8 }
  0x29   : > { %445 = shalt.err (!%p442_p3)
}
  0x2a   : > { %356 = dma.hbm_to_vmem [thread:$0]  (!%p645_p11), %s802_s1, 128, %s148_s23, [#allocation6]  }
  0x2b   : > { %p815_p1 = scmp.ne.s32.totalorder %s814_s27, 0  ;;  %p56_p2 = scmp.ne.s32.totalorder %s550_s11, %s546_s10 }
  0x2c   : > { %p57_p4 = scmp.eq.s32.totalorder %s562_s14, 0  ;;  %p366_p6 = scmp.lt.s32.totalorder %s562_s14, 2 }
  0x2d   : > { %s830_s25 = smov (%p815_p1, %s31_s25), 0  ;;  %p816_p12 = scmp.ne.s32.totalorder %s809_s18, 0 }
  0x2e   : > { %s42_s24 = ssub.s32 %s558_s13, %s830_s25  ;;  %p58_p9 = por %p57_p4, %p56_p2 }
  0x2f   : > { %p47_p8 = scmp.eq.s32.totalorder %s42_s24, 0  ;;  %p686_p0 = por %p816_p12, %p56_p2 }
  0x30   : > { %s158_s30 = sand.u32 1, %s550_s11   ;;  %s336_s27 = sshll.u32 %s558_s13, 7 }
  0x31   : > { %s694_s3 = scalar_select %p47_p8, %s550_s11, %s49_s26  }
  0x32   : > { %s335_s23 = sshll.u32 %s158_s30, 3  ;;  %s700_s6 = scalar_lea.hbm %s801_s0, %s336_s27 }
  0x33   : > { %s162_s18 = scalar_lea.vmem [#allocation2], %s335_s23  ;;  %p704_p11 = pnand %p366_p6, %p58_p9 }
  0x34   : > { %s171_s7 = sshll.u32 %s162_s18, 4  ;;  %s159_s26 = scalar_lea.sflag [#allocation3], %s158_s30  ;;  %s702_s7 = int_to_ptr.vmem [resolvable:$true] %s171_s7 }
  0x35   : > { %s446_s15 = scalar_lea.hbm %s700_s6, 128  ;;  %p448_p7 = pneg %p704_p11 }
  0x36   : > { %p447_p5 = scmp.ne.s32.totalorder %s700_s6, %s446_s15  ;;  %s451_s28 = scalar_lea.hbm %s801_s0, 256 }
  0x37   : > { %p452_p3 = scmp.lt.u32.totalorder %s700_s6, %s801_s0  ;;  %p453_p1 = scmp.lt.u32.totalorder %s451_s28, %s446_s15 }
  0x38   : > { %p449_p10 = pnand %p448_p7, %p447_p5  ;;  %p455_p4 = scmp.lt.u32.totalorder %s446_s15, %s700_s6 }
  0x39   : > { %p454_p2 = por %p453_p1, %p452_p3 }
  0x3a   : > { %p450_p13 = pneg %p449_p10 }
  0x3b   : > { %p456_p6 = por %p455_p4, %p454_p2 }
  0x3d   : > { %p457_p8 = pnand %p456_p6, %p450_p13 }
  0x3f   : > { %460 = shalt.err (!%p457_p8)
}
  0x40   : > { %s461_s30 = scalar_lea.vmem %s702_s7, 128  ;;  %s565_s27 = smov [#allocation2]  }
  0x41   : > { %p462_p9 = scmp.ne.s32.totalorder %s702_s7, %s461_s30  ;;  %s466_s4 = sshll.u32 %s565_s27, 4  ;;  %s467_s4 = int_to_ptr.vmem [resolvable:$false] %s466_s4 }
  0x42   : > { %s468_s5 = scalar_lea.vmem %s467_s4, 256  ;;  %p469_p10 = scmp.lt.s32.totalorder %s702_s7, %s467_s4 }
  0x43   : > { %p464_p12 = pnand %p462_p9, %p448_p7  ;;  %p470_p3 = scmp.lt.s32.totalorder %s468_s5, %s461_s30 }
  0x45   : > { %p465_p5 = pneg %p464_p12  ;;  %p471_p1 = por %p470_p3, %p469_p10 }
  0x47   : > { %p472_p2 = pnand %p471_p1, %p465_p5 }
  0x49   : > { %475 = shalt.err (!%p472_p2)
}
  0x4a   : > { %360 = dma.hbm_to_vmem [thread:$0]  (!%p704_p11), %s700_s6, 128, %s702_s7, %s159_s26  }
  0x4b   : > { %p819_p13 = scmp.ne.s32.totalorder %s812_s21, 0 }
  0x4c   : > { %s736_s18 = sand.u32 (!%p819_p13), 1, %s546_s10   ;;  %p820_p7 = scmp.ne.s32.totalorder (!%p819_p13), %s810_s19, 0 }
  0x4d   : > { %180 = sbr.rel (%p819_p13) target bundleno = 113 (0x71), region = 28  ;;  %s338_s15 = sshll.u32 (!%p819_p13), %s736_s18, 3 }
  0x4e   : > { %s183_s16 = scalar_lea.sflag (!%p819_p13), [#allocation3], %s736_s18  ;;  %s186_s22 = scalar_lea.vmem (!%p819_p13), [#allocation2], %s338_s15 }
  0x54   : > { %529 = dma.done.wait (%p820_p7), %s183_s16, 128  }
  0x55   : > { %531 = vsyncadd (%p820_p7), %s183_s16, 4294967168  ;;  %p821_p4 = scmp.ne.s32.totalorder %s808_s17, 0 }
  0x57   : > { %533 = dma.done.wait (%p821_p4), [#allocation6], 128  }
  0x58   : > { %535 = vsyncadd (%p821_p4), [#allocation6], 4294967168  ;;  %s210_s21 = scalar_lea.vmem [#allocation7], %s338_s15  ;;  %s342_s7 = sshll.u32 %s554_s12, 7  ;;  %v211_v0 = vld [vmem:[%s186_s22] sm:$0xff]  ;;  %v212_v1 = vld [vmem:[#allocation5] sm:$0xff] }
  0x59   : > { %s232_s6 = sshll.u32 %s210_s21, 4  ;;  %vm214_vm0 = vcmask 261120   ;;  %v213_v2 = vadd.f32 %v212_v1, %v211_v0  ;;  %s754_s17 = scalar_lea.hbm %s803_s2, %s342_s7  ;;  %s749_s6 = int_to_ptr.vmem [resolvable:$true] %s232_s6 }
  0x5a   : > { %s217_s26 = scalar_lea.sflag [#allocation4], %s736_s18  ;;  %s476_s28 = scalar_lea.vmem %s749_s6, 128 }
  0x5b   : > { %215 = vst.msk [vmem:[%s210_s21] sm:$0xff] %vm214_vm0, %v213_v2  ;;  %p477_p11 = scmp.ne.s32.totalorder %s749_s6, %s476_s28  ;;  %s566_s12 = smov [#allocation7]  }
  0x5c   : > { %s480_s24 = sshll.u32 %s566_s12, 4  ;;  %s481_s24 = int_to_ptr.vmem [resolvable:$false] %s480_s24 }
  0x5d   : > { %p478_p6 = pnand %p477_p11, %p686_p0  ;;  %s482_s23 = scalar_lea.vmem %s481_s24, 256 }
  0x5e   : > { %p483_p9 = scmp.lt.s32.totalorder %s749_s6, %s481_s24  ;;  %p484_p12 = scmp.lt.s32.totalorder %s482_s23, %s476_s28 }
  0x5f   : > { %p479_p8 = pneg %p478_p6 }
  0x60   : > { %p485_p5 = por %p484_p12, %p483_p9 }
  0x62   : > { %p486_p10 = pnand %p485_p5, %p479_p8 }
  0x64   : > { %489 = shalt.err (!%p486_p10)
}
  0x65   : > { %s490_s30 = scalar_lea.hbm %s754_s17, 128  ;;  %s494_s5 = scalar_lea.hbm %s803_s2, 256 }
  0x66   : > { %p491_p3 = scmp.ne.s32.totalorder %s754_s17, %s490_s30  ;;  %p495_p13 = scmp.lt.u32.totalorder %s754_s17, %s803_s2 }
  0x67   : > { %p496_p7 = scmp.lt.u32.totalorder %s494_s5, %s490_s30  ;;  %p498_p11 = scmp.lt.u32.totalorder %s490_s30, %s754_s17 }
  0x68   : > { %p492_p1 = pnand %p491_p3, %p686_p0 }
  0x69   : > { %p497_p4 = por %p496_p7, %p495_p13 }
  0x6a   : > { %p493_p2 = pneg %p492_p1 }
  0x6b   : > { %p499_p6 = por %p498_p11, %p497_p4 }
  0x6d   : > { %p500_p8 = pnand %p499_p6, %p493_p2 }
  0x6f   : > { %503 = shalt.err (!%p500_p8)
}
  0x70   : > { %351 = dma.vmem_to_hbm [thread:$0]  (%p686_p0), %s749_s6, 128, %s754_s17, %s217_s26  }
  0x71 PF: > { %s244_s16 = sand.u32 1, %s542_s9   ;;  %p822_p9 = scmp.ne.s32.totalorder %s811_s20, 0 }
  0x72   : > { %p823_p12 = scmp.ge.s32.totalorder %s562_s14, 2  ;;  %s245_s22 = scalar_lea.sflag [#allocation4], %s244_s16 }
  0x74   : > { %p362_p5 = pnand %p823_p12, %p822_p9 }
  0x76   : > { %537 = dma.done.wait (!%p362_p5), %s245_s22, 128  }
  0x77   : > { %539 = vsyncadd (!%p362_p5), %s245_s22, 4294967168  ;;  %s19_s14 = sadd.s32 1, %s562_s14   ;;  %s824_s9 = smov %s546_s10 }
  0x78   : > { %p16_p10 = scmp.ge.s32.totalorder %s19_s14, 4   ;;  %s825_s10 = smov %s550_s11 }
  0x79   : > { %s826_s11 = smov %s694_s3  ;;  %s827_s12 = smov %s558_s13 }
  0x7a   : > { %s828_s13 = smov %s830_s25  ;;  %18 = sbr.rel (!%p16_p10) target bundleno = 7 (0x7), region = 78 }
  0x81   :  { %250 = vsyncpa [#allocation3], 1 }
  0x82   :  { %252 = vsyncpa [#allocation3 + $0x1], 1 }
  0x83   :  { %253 = vsyncpa [#allocation6], 1 }
  0x84   :  { %254 = vsyncpa [#allocation4], 1 }
  0x85   :  { %256 = vsyncpa [#allocation4 + $0x1], 1 }

</bundles_post_ra>
